<compile_context>
chip_gen: v6e
topology: v6e:2x2x1
jax: 0.10.0
libtpu: 0.0.40
codegen_flags: <defaults>
</compile_context>

<pallas_src>
import jax
import jax.numpy as jnp
from jax.experimental import pallas as pl
from jax.experimental.pallas import tpu as pltpu

EPS = 1e-5


def _sentiment_kernel(x_ref, w1_ref, b1_ref, w2_ref, b2_ref, o_ref):
    x = x_ref[...]                                   # (TB, D)  f32
    w1 = w1_ref[...]                                 # (2, D)   lane-dense fc1 weight
    b1 = b1_ref[...]                                 # (2, 1)
    w2 = w2_ref[...]                                 # (3, 2)   gamma folded in
    b2 = b2_ref[...]                                 # (3, 1)   beta folded in

    # fc1 in the transposed frame: h^T = W1 @ x^T via an NT dot_general
    # (contract dim 1 of both operands, same pattern as flash attention's
    # q @ k^T) -> the big (TB, D) x tile goes straight to the MXU, no XLU
    # transpose is materialized.
    h = jax.lax.dot_general(
        w1, x,
        dimension_numbers=(((1,), (1,)), ((), ())),
        preferred_element_type=jnp.float32,
    ) + b1                                           # (2, TB)
    h = jnp.maximum(h, 0.0)

    # GroupNorm(num_groups=1, num_channels=2): the 2 channels are the 2 sublane
    # rows, so mean/var are cheap VPU arithmetic (no cross-lane reduction).
    h0 = h[0:1, :]                                   # (1, TB)
    h1 = h[1:2, :]                                   # (1, TB)
    mean = 0.5 * (h0 + h1)
    diff = h0 - h1
    var = 0.25 * diff * diff                         # biased variance over 2 channels
    inv = jax.lax.rsqrt(var + EPS)
    hn = (h - mean) * inv                            # (2, TB); affine folded into fc2

    # Dropout(0.3) -> identity at inference.
    # TODO(synk): training-mode dropout mask not implemented.

    # fc2 as two VPU FMAs (keeps the serial per-tile epilogue off the MXU
    # result path; a 2x3 matmul would waste a push/pop).
    y = (w2[:, 0:1] * hn[0:1, :]
         + w2[:, 1:2] * hn[1:2, :]
         + b2)                                       # (3, TB), lane-dense
    o_ref[...] = y


def _round_up(v, m):
    return ((v + m - 1) // m) * m


def _vmem_budget():
    """Per-generation (vmem_limit_bytes, x_tile_byte_budget)."""
    try:
        phys = int(pltpu.get_tpu_info().vmem_capacity_bytes)
    except Exception:
        phys = 64 << 20                          # conservative: v7x-sized VMEM
    if phys >= (96 << 20):                       # v5e / v6e: 128 MiB physical
        return 80 << 20, 8 << 20
    else:                                        # v7x: 64 MiB physical
        return 48 << 20, 6 << 20


def _pick_tile(B, D, x_tile_budget):
    """Batch tile TB: multiple of 128 (lane-dense (3, TB) output block), sized by
    the per-generation byte budget on the lane-padded f32 x tile, with >= 2 grid
    steps whenever B allows so both v7x TensorCores get work."""
    row_bytes = 4 * _round_up(D, 128)            # f32 row, lane-padded in VMEM
    max_rows = max(128, (x_tile_budget // row_bytes) // 128 * 128)
    tb = min(max_rows, _round_up(B, 128))
    if B > 128 and pl.cdiv(B, tb) < 2:
        tb = max(128, _round_up(pl.cdiv(B, 2), 128))   # split across the 2 TCs
    return tb


def sentiment_forward(x, params):
    """x: (B, D) f32.
    params (PyTorch layout): w1 (2, D), b1 (2,), gamma (2,), beta (2,),
                             w2 (3, 2), b2 (3,).
    Returns (B, 3) f32."""
    B, D = x.shape
    x = x.astype(jnp.float32)

    w1 = params["w1"].astype(jnp.float32)                        # (2, D) lane-dense
    b1 = params["b1"].astype(jnp.float32).reshape(2, 1)
    gamma = params["gamma"].astype(jnp.float32)                  # (2,)
    beta = params["beta"].astype(jnp.float32)                    # (2,)
    w2 = params["w2"].astype(jnp.float32)                        # (3, 2)
    b2 = params["b2"].astype(jnp.float32)                        # (3,)

    # Fold GroupNorm affine into fc2 (exact, both linear):
    #   (hn*gamma + beta) @ W2^T + b2 = hn @ (W2*gamma)^T + (W2 @ beta + b2)
    w2_eff = w2 * gamma[None, :]                                 # (3, 2)
    b2_eff = (w2 @ beta + b2).reshape(3, 1)                      # (3, 1)

    vmem_limit, x_budget = _vmem_budget()
    TB = _pick_tile(B, D, x_budget)
    B_pad = _round_up(B, TB)
    if B_pad != B:
        x = jnp.pad(x, ((0, B_pad - B), (0, 0)))  # zero rows benign (eps > 0); sliced off below

    grid = (B_pad // TB,)

    out_t = pl.pallas_call(
        _sentiment_kernel,
        out_shape=jax.ShapeDtypeStruct((3, B_pad), jnp.float32),
        grid_spec=pltpu.PrefetchScalarGridSpec(
            num_scalar_prefetch=0,
            grid=grid,
            in_specs=[
                pl.BlockSpec((TB, D), lambda i: (i, 0)),         # x: streamed per tile (double-buffered)
                pl.BlockSpec((2, D), lambda i: (0, 0)),          # tiny weights/biases stay resident
                pl.BlockSpec((2, 1), lambda i: (0, 0)),
                pl.BlockSpec((3, 2), lambda i: (0, 0)),
                pl.BlockSpec((3, 1), lambda i: (0, 0)),
            ],
            out_specs=pl.BlockSpec((3, TB), lambda i: (0, i)),   # lane-dense writeback
        ),
        compiler_params=pltpu.CompilerParams(
            dimension_semantics=("parallel",),                   # shards tiles across v7x's 2 TCs
            vmem_limit_bytes=vmem_limit,
        ),
    )(x, w1, b1, w2_eff, b2_eff)

    # TODO(synk): if upstream can supply x in bf16, streaming it as bf16 (with f32
    # MXU accumulation) would halve HBM read traffic; kept f32 to match PyTorch.
    return out_t[:, :B].T                                        # (B, 3)


def init_params(input_size, key):
    """Deterministic init mimicking PyTorch nn.Linear defaults
    (uniform +/- 1/sqrt(fan_in)); GroupNorm affine gamma=1, beta=0."""
    k1, k2, k3, k4 = jax.random.split(key, 4)
    bound1 = 1.0 / jnp.sqrt(input_size)
    bound2 = 1.0 / jnp.sqrt(2.0)
    return {
        "w1": jax.random.uniform(k1, (2, input_size), jnp.float32, -bound1, bound1),
        "b1": jax.random.uniform(k2, (2,), jnp.float32, -bound1, bound1),
        "gamma": jnp.ones((2,), jnp.float32),
        "beta": jnp.zeros((2,), jnp.float32),
        "w2": jax.random.uniform(k3, (3, 2), jnp.float32, -bound2, bound2),
        "b2": jax.random.uniform(k4, (3,), jnp.float32, -bound2, bound2),
    }


def reference_forward(x, params):
    """Pure-JAX reference of the PyTorch forward (eval mode)."""
    h = jnp.maximum(x @ params["w1"].T + params["b1"], 0.0)
    mean = jnp.mean(h, axis=-1, keepdims=True)
    var = jnp.mean((h - mean) ** 2, axis=-1, keepdims=True)
    h = (h - mean) / jnp.sqrt(var + EPS)
    h = h * params["gamma"] + params["beta"]
    return h @ params["w2"].T + params["b2"]


if __name__ == "__main__":
    key = jax.random.PRNGKey(0)
    k_x, k_p = jax.random.split(key)

    B, INPUT_SIZE = 8, 32
    x = jax.random.normal(k_x, (B, INPUT_SIZE), jnp.float32)
    params = init_params(INPUT_SIZE, k_p)

    out = sentiment_forward(x, params)
    out = jax.block_until_ready(out)

    ref = reference_forward(x, params)
    assert out.shape == (B, 3)
    assert jnp.allclose(out, ref, atol=2e-5, rtol=2e-5)

    print("KERNEL_OK")
</pallas_src>

<mosaic_0001>
module attributes {stable_mosaic.version = 11 : i64} {
  func.func @_sentiment_kernel(%arg0: i32, %arg1: memref<128x32xf32, #tpu.memory_space<vmem>>, %arg2: memref<2x32xf32, #tpu.memory_space<vmem>>, %arg3: memref<2x1xf32, #tpu.memory_space<vmem>>, %arg4: memref<3x2xf32, #tpu.memory_space<vmem>>, %arg5: memref<3x1xf32, #tpu.memory_space<vmem>>, %arg6: memref<3x128xf32, #tpu.memory_space<vmem>>) attributes {dimension_semantics = [#tpu.dimension_semantics<parallel>], iteration_bounds = array<i64: 1>, scalar_prefetch = 0 : i64, scratch_operands = 0 : i64, tpu.core_type = #tpu.core_type<tc>, window_params = [{transform_indices = @transform_0, window_bounds = array<i64: 128, 32>}, {pipeline_mode = #tpu.pipeline_mode<synchronous>, transform_indices = @transform_1, window_bounds = array<i64: 2, 32>}, {pipeline_mode = #tpu.pipeline_mode<synchronous>, transform_indices = @transform_2, window_bounds = array<i64: 2, 1>}, {pipeline_mode = #tpu.pipeline_mode<synchronous>, transform_indices = @transform_3, window_bounds = array<i64: 3, 2>}, {pipeline_mode = #tpu.pipeline_mode<synchronous>, transform_indices = @transform_4, window_bounds = array<i64: 3, 1>}, {transform_indices = @transform_5, window_bounds = array<i64: 3, 128>}]} {
    %c0 = arith.constant 0 : index
    %c0_0 = arith.constant 0 : index
    %0 = vector.load %arg1[%c0, %c0_0] : memref<128x32xf32, #tpu.memory_space<vmem>>, vector<128x32xf32>
    %c0_1 = arith.constant 0 : index
    %c0_2 = arith.constant 0 : index
    %1 = vector.load %arg2[%c0_1, %c0_2] : memref<2x32xf32, #tpu.memory_space<vmem>>, vector<2x32xf32>
    %c0_3 = arith.constant 0 : index
    %c0_4 = arith.constant 0 : index
    %2 = vector.load %arg3[%c0_3, %c0_4] : memref<2x1xf32, #tpu.memory_space<vmem>>, vector<2x1xf32>
    %c0_5 = arith.constant 0 : index
    %c0_6 = arith.constant 0 : index
    %3 = vector.load %arg4[%c0_5, %c0_6] : memref<3x2xf32, #tpu.memory_space<vmem>>, vector<3x2xf32>
    %c0_7 = arith.constant 0 : index
    %c0_8 = arith.constant 0 : index
    %4 = vector.load %arg5[%c0_7, %c0_8] : memref<3x1xf32, #tpu.memory_space<vmem>>, vector<3x1xf32>
    %cst = arith.constant dense<0.000000e+00> : vector<2x128xf32>
    %5 = tpu.matmul %1, %0, %cst {dimension_numbers = #tpu.dot_dimension_numbers<[1], [1], [0], [0], [0, 0, 1, 0], [], []>} : vector<2x32xf32>, vector<128x32xf32>, vector<2x128xf32> -> vector<2x128xf32>
    %6 = vector.broadcast %2 : vector<2x1xf32> to vector<2x128xf32>
    %7 = arith.addf %5, %6 : vector<2x128xf32>
    %cst_9 = arith.constant 0.000000e+00 : f32
    %8 = vector.broadcast %cst_9 : f32 to vector<2x128xf32>
    %9 = arith.maximumf %7, %8 : vector<2x128xf32>
    %10 = vector.extract_strided_slice %9 {offsets = [0, 0], sizes = [1, 128], strides = [1, 1]} : vector<2x128xf32> to vector<1x128xf32>
    %11 = vector.extract_strided_slice %9 {offsets = [1, 0], sizes = [1, 128], strides = [1, 1]} : vector<2x128xf32> to vector<1x128xf32>
    %12 = arith.addf %10, %11 : vector<1x128xf32>
    %cst_10 = arith.constant 5.000000e-01 : f32
    %13 = vector.broadcast %cst_10 : f32 to vector<1x128xf32>
    %14 = arith.mulf %13, %12 : vector<1x128xf32>
    %15 = arith.subf %10, %11 : vector<1x128xf32>
    %cst_11 = arith.constant 2.500000e-01 : f32
    %16 = vector.broadcast %cst_11 : f32 to vector<1x128xf32>
    %17 = arith.mulf %16, %15 : vector<1x128xf32>
    %18 = arith.mulf %17, %15 : vector<1x128xf32>
    %cst_12 = arith.constant 9.99999974E-6 : f32
    %19 = vector.broadcast %cst_12 : f32 to vector<1x128xf32>
    %20 = arith.addf %18, %19 : vector<1x128xf32>
    %21 = math.rsqrt %20 : vector<1x128xf32>
    %22 = vector.broadcast %14 : vector<1x128xf32> to vector<2x128xf32>
    %23 = arith.subf %9, %22 : vector<2x128xf32>
    %24 = vector.broadcast %21 : vector<1x128xf32> to vector<2x128xf32>
    %25 = arith.mulf %23, %24 : vector<2x128xf32>
    %26 = vector.extract_strided_slice %3 {offsets = [0, 0], sizes = [3, 1], strides = [1, 1]} : vector<3x2xf32> to vector<3x1xf32>
    %27 = vector.extract_strided_slice %25 {offsets = [0, 0], sizes = [1, 128], strides = [1, 1]} : vector<2x128xf32> to vector<1x128xf32>
    %28 = vector.broadcast %26 : vector<3x1xf32> to vector<3x128xf32>
    %29 = vector.broadcast %27 : vector<1x128xf32> to vector<3x128xf32>
    %30 = arith.mulf %28, %29 : vector<3x128xf32>
    %31 = vector.extract_strided_slice %3 {offsets = [0, 1], sizes = [3, 1], strides = [1, 1]} : vector<3x2xf32> to vector<3x1xf32>
    %32 = vector.extract_strided_slice %25 {offsets = [1, 0], sizes = [1, 128], strides = [1, 1]} : vector<2x128xf32> to vector<1x128xf32>
    %33 = vector.broadcast %31 : vector<3x1xf32> to vector<3x128xf32>
    %34 = vector.broadcast %32 : vector<1x128xf32> to vector<3x128xf32>
    %35 = arith.mulf %33, %34 : vector<3x128xf32>
    %36 = arith.addf %30, %35 : vector<3x128xf32>
    %37 = vector.broadcast %4 : vector<3x1xf32> to vector<3x128xf32>
    %38 = arith.addf %36, %37 : vector<3x128xf32>
    %c0_13 = arith.constant 0 : index
    %c0_14 = arith.constant 0 : index
    %39 = vector.load %arg6[%c0_13, %c0_14] : memref<3x128xf32, #tpu.memory_space<vmem>>, vector<3x128xf32>
    tpu.vector_store %arg6[%c0_13, %c0_14], %38 {strides = array<i32>} : memref<3x128xf32, #tpu.memory_space<vmem>>, vector<3x128xf32>,
    return
  }
  func.func @transform_0(%arg0: i32) -> (i32, i32) {
    %c0_i32 = arith.constant 0 : i32
    %c0_i32_0 = arith.constant 0 : i32
    return %arg0, %c0_i32 : i32, i32
  }
  func.func @transform_1(%arg0: i32) -> (i32, i32) {
    %c0_i32 = arith.constant 0 : i32
    %c0_i32_0 = arith.constant 0 : i32
    %c0_i32_1 = arith.constant 0 : i32
    return %c0_i32, %c0_i32_0 : i32, i32
  }
  func.func @transform_2(%arg0: i32) -> (i32, i32) {
    %c0_i32 = arith.constant 0 : i32
    %c0_i32_0 = arith.constant 0 : i32
    %c0_i32_1 = arith.constant 0 : i32
    return %c0_i32, %c0_i32_0 : i32, i32
  }
  func.func @transform_3(%arg0: i32) -> (i32, i32) {
    %c0_i32 = arith.constant 0 : i32
    %c0_i32_0 = arith.constant 0 : i32
    %c0_i32_1 = arith.constant 0 : i32
    return %c0_i32, %c0_i32_0 : i32, i32
  }
  func.func @transform_4(%arg0: i32) -> (i32, i32) {
    %c0_i32 = arith.constant 0 : i32
    %c0_i32_0 = arith.constant 0 : i32
    %c0_i32_1 = arith.constant 0 : i32
    return %c0_i32, %c0_i32_0 : i32, i32
  }
  func.func @transform_5(%arg0: i32) -> (i32, i32) {
    %c0_i32 = arith.constant 0 : i32
    %c0_i32_0 = arith.constant 0 : i32
    return %c0_i32, %arg0 : i32, i32
  }
}

</mosaic_0001>

<bundles_post_ra>
// kernel: tpu_custom_call.1
= control target key start
LH: loop header
LB: loop body
LE: loop exit
PB: predicated region body
PF: predicated region fallthrough
CT: control target
= control target key end

     0   :  { %vm46_vm0 = vcmask 261120   ;;  %v331_v1 = vmov 0.0   ;;  %vm332_vm1 = vmmov 0   ;;  %v333_v2 = vmov 0   ;;  %s446_s0 = inlined_call_operand.vmem [shape: f32[128,32], index: 0, kind: input, shape index: {}]   ;;  %s447_s1 = inlined_call_operand.vmem [shape: f32[2,32], index: 1, kind: input, shape index: {}]   ;;  %s448_s2 = inlined_call_operand.vmem [shape: f32[2,1], index: 2, kind: input, shape index: {}]   ;;  %s449_s3 = inlined_call_operand.vmem [shape: f32[3,2], index: 3, kind: input, shape index: {}]   ;;  %s450_s4 = inlined_call_operand.vmem [shape: f32[3,1], index: 4, kind: input, shape index: {}]   ;;  %s451_s5 = inlined_call_operand.hbm [shape: f32[3,128], index: 5, kind: output, shape index: {}]  }
   0x1   :  { %v36_v0 = vld [vmem:[%s446_s0 + $0x78] sm:$0xff]  ;;  %264 = vmatprep.subr.mxu0 %v331_v1  ;;  %296 = vmatprep.mubr.msk.f32.mxu0 %vm332_vm1, %v331_v1  ;;  %v35_v3 = vld [vmem:[%s446_s0 + $0x70] sm:$0xff]  ;;  %v334_v4 = vmov 1   ;;  %v38_v5 = vld [vmem:[%s448_s2] sm:$0x3] }
   0x2   :  { %265 = vmatpush3.xpose.msk.msra.mxu0 %vm46_vm0, %v36_v0  ;;  %304 = vset.pattern.permute.xlu0 %v333_v2  ;;  %v39_v6 = vld [vmem:[%s449_s3] sm:$0x7] }
   0x3   :  { %266 = vmatprep.subr.mxu0 %v331_v1  ;;  %305 = vset.pattern.permute.xlu1 %v334_v4 }
   0x4   :  { %43 = vperm.xlu0 %304, %v38_v5  }
   0x6   :  { %267 = vmatpush3.xpose.msk.msra.mxu0 %vm46_vm0, %v35_v3 }
   0x7   :  { %10 = vsyncpa [#allocation3], 0  ;;  %268 = vmatprep.subr.mxu0 %v331_v1  ;;  %v34_v7 = vld [vmem:[%s446_s0 + $0x68] sm:$0xff]  ;;  %200 = vperm.xlu1 %305, %v39_v6   ;;  %v40_v8 = vld [vmem:[%s450_s4] sm:$0x7]  ;;  %v179_v33 = vlaneseq }
   0x8   :  { %191 = vperm.xlu0 %304, %v39_v6   ;;  %v33_v9 = vld [vmem:[%s446_s0 + $0x60] sm:$0xff]  ;;  %v32_v10 = vld [vmem:[%s446_s0 + $0x58] sm:$0xff]  ;;  %v31_v11 = vld [vmem:[%s446_s0 + $0x50] sm:$0xff] }
   0x9   :  { %v30_v12 = vld [vmem:[%s446_s0 + $0x48] sm:$0xff]  ;;  %v29_v13 = vld [vmem:[%s446_s0 + $0x40] sm:$0xff]  ;;  %v28_v14 = vld [vmem:[%s446_s0 + $0x38] sm:$0xff]  ;;  %v180_v35 = vshrl.u32 %v179_v33, 7 }
   0xa   :  { %269 = vmatpush3.xpose.msk.msra.mxu0 %vm46_vm0, %v34_v7  ;;  %v27_v15 = vld [vmem:[%s446_s0 + $0x30] sm:$0xff]  ;;  %v26_v16 = vld [vmem:[%s446_s0 + $0x28] sm:$0xff]  ;;  %v25_v17 = vld [vmem:[%s446_s0 + $0x20] sm:$0xff] }
   0xb   :  { %270 = vmatprep.subr.mxu0 %v331_v1  ;;  %306 = vset.pattern.permute.xlu1 %v333_v2  ;;  %v24_v18 = vld [vmem:[%s446_s0 + $0x18] sm:$0xff]  ;;  %v23_v19 = vld [vmem:[%s446_s0 + $0x10] sm:$0xff]  ;;  %v22_v20 = vld [vmem:[%s446_s0 + $0x8] sm:$0xff]  ;;  %v181_v37 = vsub.s32 0, %v180_v35  ;;  %v205_v40 = vsub.s32 1, %v180_v35 }
   0xc   :  { %211 = vperm.xlu1 %306, %v40_v8   ;;  %v21_v21 = vld [vmem:[%s446_s0] sm:$0xff]  ;;  %s335_s0 = smov [#allocation2]  }
   0xd   :  { %v37_v22 = vld [vmem:[%s447_s1] sm:$0x3]  ;;  %s222_s1 = sshll.u32 %s335_s0, 4  ;;  %s223_s1 = int_to_ptr.vmem [resolvable:$true] %s222_s1 }
   0xe   :  { %271 = vmatpush3.xpose.msk.msra.mxu0 %vm46_vm0, %v33_v9  ;;  %s309_s2 = scalar_lea.vmem %s223_s1, 64  ;;  %p314_p1 = scmp.lt.s32.totalorder %s223_s1, %s223_s1 }
   0xf   :  { %272 = vmatprep.subr.mxu0 %v331_v1  ;;  %p310_p0 = scmp.ne.s32.totalorder %s223_s1, %s309_s2  ;;  %p315_p2 = scmp.lt.s32.totalorder %s309_s2, %s309_s2 }
  0x11   :  { %p316_p3 = por %p315_p2, %p314_p1 }
  0x12   :  { %273 = vmatpush3.xpose.msk.msra.mxu0 %vm46_vm0, %v32_v10 }
  0x13   :  { %274 = vmatprep.subr.mxu0 %v331_v1  ;;  %p317_p4 = pnand %p316_p3, %p310_p0 }
  0x16   :  { %275 = vmatpush3.xpose.msk.msra.mxu0 %vm46_vm0, %v31_v11 }
  0x17   :  { %276 = vmatprep.subr.mxu0 %v331_v1 }
  0x1a   :  { %277 = vmatpush3.xpose.msk.msra.mxu0 %vm46_vm0, %v30_v12 }
  0x1b   :  { %278 = vmatprep.subr.mxu0 %v331_v1 }
  0x1e   :  { %279 = vmatpush3.xpose.msk.msra.mxu0 %vm46_vm0, %v29_v13 }
  0x1f   :  { %280 = vmatprep.subr.mxu0 %v331_v1 }
  0x22   :  { %281 = vmatpush3.xpose.msk.msra.mxu0 %vm46_vm0, %v28_v14 }
  0x23   :  { %282 = vmatprep.subr.mxu0 %v331_v1 }
  0x26   :  { %283 = vmatpush3.xpose.msk.msra.mxu0 %vm46_vm0, %v27_v15 }
  0x27   :  { %284 = vmatprep.subr.mxu0 %v331_v1 }
  0x2a   :  { %285 = vmatpush3.xpose.msk.msra.mxu0 %vm46_vm0, %v26_v16 }
  0x2b   :  { %286 = vmatprep.subr.mxu0 %v331_v1 }
  0x2e   :  { %287 = vmatpush3.xpose.msk.msra.mxu0 %vm46_vm0, %v25_v17 }
  0x2f   :  { %288 = vmatprep.subr.mxu0 %v331_v1 }
  0x32   :  { %289 = vmatpush3.xpose.msk.msra.mxu0 %vm46_vm0, %v24_v18 }
  0x33   :  { %290 = vmatprep.subr.mxu0 %v331_v1 }
  0x36   :  { %291 = vmatpush3.xpose.msk.msra.mxu0 %vm46_vm0, %v23_v19 }
  0x37   :  { %292 = vmatprep.subr.mxu0 %v331_v1 }
  0x3a   :  { %293 = vmatpush3.xpose.msk.msra.mxu0 %vm46_vm0, %v22_v20 }
  0x3b   :  { %294 = vmatprep.subr.mxu0 %v331_v1 }
  0x3e   :  { %295 = vmatpush3.xpose.msk.msra.mxu0 %vm46_vm0, %v21_v21 }
  0x41   :  { %297 = vmatmul.mubr.msk.f32.vlgmr.msra.gmra.mxu0 %vm46_vm0, %v37_v22 }
  0x7f   :  { %v44_v23 = vpop.permute.xlu0 %43 }
  0x82   :  { %v201_v43 = vpop.permute.xlu1 %200 }
  0x83   :  { %v192_v47 = vpop.permute.xlu0 %191 }
  0x87   :  { %v212_v50 = vpop.permute.xlu1 %211 }
 0x101   :  { %v164_v24 = vpop.f32.mrf.mxu0 }
 0x102   :  { %v165_v25 = vadd.f32 %v164_v24, %v44_v23 }
 0x103   :  { %v298_v26 = vpop.f32.mrf.mxu0 }
 0x104   :  { %v168_v27 = vmax.f32 %v165_v25, 0.0 }
 0x106   :  { %v170_v28 = vrot.slane %v168_v27, 1 }
 0x108   :  { %v174_v29 = vsub.f32 %v168_v27, %v170_v28  ;;  %v172_v34 = vadd.f32 %v170_v28, %v168_v27 }
 0x10a   :  { %v175_v30 = vmul.f32 0.25, %v174_v29  ;;  %v173_v36 = vmul.f32 0.5, %v172_v34 }
 0x10c   :  { %v176_v31 = vmul.f32 %v175_v30, %v174_v29  ;;  %v182_v38 = vrot.slane %v173_v36, %v181_v37 }
 0x10e   :  { %v177_v32 = vadd.f32 1e-05, %v176_v31  ;;  %v183_v41 = vsub.f32 %v168_v27, %v182_v38 }
 0x110   :  { %307 = vrsqrt.f32 %v177_v32 }
 0x11d   :  { %v308_v39 = vpop.eup %307 }
 0x11e   :  { %v187_v42 = vrot.slane %v308_v39, %v181_v37 }
 0x120   :  { %v188_v44 = vmul.f32 %v187_v42, %v183_v41 }
 0x122   :  { %v206_v45 = vrot.slane %v188_v44, %v205_v40  ;;  %v197_v46 = vrot.slane %v188_v44, %v181_v37 }
 0x124   :  { %v207_v48 = vmul.f32 %v206_v45, %v201_v43  ;;  %v198_v49 = vmul.f32 %v197_v46, %v192_v47 }
 0x126   :  { %v208_v51 = vadd.f32 %v207_v48, %v198_v49 }
 0x128   :  { %v214_v52 = vadd.f32 %v212_v50, %v208_v51 }
 0x12a   :  { %215 = vst [vmem:[#allocation2] sm:$0x7] %v214_v52 }
 0x12b   :  { %320 = shalt.err (!%p317_p4)
}
 0x12c   :  { %225 = dma.vmem_to_hbm [thread:$0]  %s223_s1, 64, %s451_s5, [#allocation3]  }
 0x12d   :  { %329 = dma.done.wait [#allocation3], 64  }
 0x12e   :  { %330 = vsyncadd [#allocation3], 4294967232 }
 0x12f   :  { %229 = vsyncpa [#allocation3], 1 }

</bundles_post_ra>
